<compile_context>
chip_gen: v6e
topology: v6e:2x2x1
jax: 0.10.0
libtpu: 0.0.40
codegen_flags: <defaults>
</compile_context>

<pallas_src>
import functools
from typing import NamedTuple

import jax
import jax.numpy as jnp
from jax.experimental import pallas as pl
from jax.experimental.pallas import tpu as pltpu

_LANE = 128        # feature dims padded (once, at param-prep time) to 128 lanes
_BF16_SUBLANE = 16  # bf16 packs 16 sublanes per vreg


def _round_up(n, m):
    return ((n + m - 1) // m) * m


class EncoderParams(NamedTuple):
    """Pre-padded, pre-cast weights (do this ONCE, reuse across calls)."""
    w1: jax.Array   # (In_p, H_p)  bf16, zero-padded
    b1: jax.Array   # (1, H_p)     f32,  zero-padded
    w2: jax.Array   # (H_p, H_p)   bf16, zero-padded
    b2: jax.Array   # (1, H_p)     f32,  zero-padded
    input_size: int
    hidden_size: int


def prepare_params(w1, b1, w2, b2):
    """w1: (In, H), w2: (H, H) stored (in, out) -- i.e. nn.Linear weight^T."""
    In, H = w1.shape
    assert w2.shape == (H, H)
    In_p = _round_up(In, _LANE)
    H_p = _round_up(H, _LANE)
    w1p = jnp.zeros((In_p, H_p), jnp.bfloat16).at[:In, :H].set(w1.astype(jnp.bfloat16))
    w2p = jnp.zeros((H_p, H_p), jnp.bfloat16).at[:H, :H].set(w2.astype(jnp.bfloat16))
    b1p = jnp.zeros((1, H_p), jnp.float32).at[0, :H].set(b1.reshape(-1).astype(jnp.float32))
    b2p = jnp.zeros((1, H_p), jnp.float32).at[0, :H].set(b2.reshape(-1).astype(jnp.float32))
    return EncoderParams(w1p, b1p, w2p, b2p, In, H)


def _fast_tanh_dtype():
    """bf16 tanh on chips with a bf16 EUP (v6e / v7x); f32 elsewhere (v5e...)."""
    try:
        kind = jax.devices()[0].device_kind.lower()
    except Exception:
        return jnp.float32
    if "v6" in kind or "v7" in kind or "7x" in kind:
        return jnp.bfloat16
    return jnp.float32


def _choose_tb(B, block_batch):
    """Batch tile: big (amortize ~0.35us/step), multiple of 16 sublanes, and
    >=2 tiles whenever possible so 'parallel' can use both v7x TensorCores."""
    if B <= 32:
        return B                                   # single tile == full batch dim
    return min(_round_up(block_batch, _BF16_SUBLANE),
               _round_up(pl.cdiv(B, 2), _BF16_SUBLANE))


def _encoder_kernel(x_ref, w1_ref, b1_ref, w2_ref, b2_ref, o_ref, h_ref, *,
                    tanh_dtype):
    # fc1 + tanh: computed once per batch tile (n == 0), cached in bf16 scratch.
    @pl.when(pl.program_id(1) == 0)
    def _():
        h = jnp.dot(x_ref[...], w1_ref[...], preferred_element_type=jnp.float32)
        h = (h + b1_ref[...]).astype(tanh_dtype)   # bf16 on v6e/v7x, f32 on v5e
        h_ref[...] = jnp.tanh(h).astype(h_ref.dtype)
    # fc2 + tanh over this N tile of the output features.
    y = jnp.dot(h_ref[...], w2_ref[...], preferred_element_type=jnp.float32)
    o_ref[...] = jnp.tanh(y + b2_ref[...]).astype(o_ref.dtype)


def encoder_first_pose(x, params: EncoderParams, *, block_batch=512, block_n=512):
    """tanh(tanh(x @ w1 + b1) @ w2 + b2)  ==  Encoder_firstPose.forward."""
    out_dtype = x.dtype
    B, In = x.shape
    assert In == params.input_size
    In_p, H_p = params.w1.shape
    H = params.hidden_size

    # Per-call activation prep: bf16 cast (MXU feed); lane-pad only if needed.
    xb = x.astype(jnp.bfloat16)
    if In_p != In:
        xb = jnp.zeros((B, In_p), jnp.bfloat16).at[:, :In].set(xb)

    TB = _choose_tb(B, block_batch)
    TN = min(H_p, _round_up(block_n, _LANE))
    while H_p % TN:                                # TN must divide H_p (>=128)
        TN -= _LANE
    nb = pl.cdiv(B, TB)                            # ragged last tile is masked
    nn = H_p // TN
    grid = (nb, nn)

    out_itemsize = jnp.dtype(out_dtype).itemsize

    # VMEM budget: double-buffered streamed blocks + resident weights + scratch.
    vmem_need = (2 * TB * In_p * 2            # x blocks (bf16)
                 + 2 * In_p * H_p * 2         # w1 (bf16, resident)
                 + 2 * H_p * 4                # b1 (f32)
                 + 2 * H_p * TN * 2           # w2 N-tiles (bf16)
                 + 2 * TN * 4                 # b2 tiles
                 + 2 * TB * TN * out_itemsize  # out blocks
                 + TB * H_p * 2)              # h scratch (bf16)
    vmem_limit = int(min(max(2 * vmem_need, 32 * 1024 * 1024), 64 * 1024 * 1024))

    cost = pl.CostEstimate(
        flops=2 * B * (In_p * H_p + H_p * H_p),
        transcendentals=2 * B * H_p,
        bytes_accessed=(B * In_p * 2                       # x (bf16)
                        + In_p * H_p * 2 + H_p * 4         # w1 / b1 once
                        + nb * (H_p * H_p * 2 + H_p * 4)   # w2 / b2 per batch tile
                        + B * H_p * out_itemsize),         # out
    )

    kernel = functools.partial(_encoder_kernel, tanh_dtype=_fast_tanh_dtype())

    out_p = pl.pallas_call(
        kernel,
        out_shape=jax.ShapeDtypeStruct((B, H_p), out_dtype),
        grid_spec=pltpu.PrefetchScalarGridSpec(
            num_scalar_prefetch=0,
            grid=grid,
            in_specs=[
                pl.BlockSpec((TB, In_p), lambda i, n: (i, 0)),   # x: streamed per batch tile
                pl.BlockSpec((In_p, H_p), lambda i, n: (0, 0)),  # w1: VMEM-resident
                pl.BlockSpec((1, H_p), lambda i, n: (0, 0)),     # b1: resident
                pl.BlockSpec((H_p, TN), lambda i, n: (0, n)),    # w2: streamed over fc2 cols
                pl.BlockSpec((1, TN), lambda i, n: (0, n)),      # b2: streamed over fc2 cols
            ],
            out_specs=pl.BlockSpec((TB, TN), lambda i, n: (i, n)),
            scratch_shapes=[pltpu.VMEM((TB, H_p), jnp.bfloat16)],  # cached fc1 activation
        ),
        compiler_params=pltpu.CompilerParams(
            dimension_semantics=("parallel", "arbitrary"),
            vmem_limit_bytes=vmem_limit),
        cost_estimate=cost,
    )(xb, params.w1, params.b1, params.w2, params.b2)

    if H != H_p:
        out_p = out_p[:, :H]
    return out_p


def init_params(key, input_size, hidden_size, dtype=jnp.float32):
    # Mimics nn.Linear's uniform(-1/sqrt(fan_in), 1/sqrt(fan_in)) init.
    k1, k2, k3, k4 = jax.random.split(key, 4)
    lim1 = 1.0 / jnp.sqrt(input_size)
    lim2 = 1.0 / jnp.sqrt(hidden_size)
    w1 = jax.random.uniform(k1, (input_size, hidden_size), dtype, -lim1, lim1)
    b1 = jax.random.uniform(k2, (1, hidden_size), dtype, -lim1, lim1)
    w2 = jax.random.uniform(k3, (hidden_size, hidden_size), dtype, -lim2, lim2)
    b2 = jax.random.uniform(k4, (1, hidden_size), dtype, -lim2, lim2)
    return w1, b1, w2, b2


if __name__ == "__main__":
    key = jax.random.PRNGKey(0)
    batch, input_size, hidden_size = 8, 16, 32

    kx, kp = jax.random.split(key)
    x = jax.random.normal(kx, (batch, input_size), jnp.float32)
    w1, b1, w2, b2 = init_params(kp, input_size, hidden_size)

    params = prepare_params(w1, b1, w2, b2)        # one-time weight prep
    out = encoder_first_pose(x, params)
    out = jax.block_until_ready(out)
    assert out.shape == (batch, hidden_size)

    # Reference emulating the kernel's numerics (bf16 MXU feed, f32 accum,
    # first tanh in the kernel's tanh dtype, bf16 inter-layer activation).
    td = _fast_tanh_dtype()
    w1b, w2b = w1.astype(jnp.bfloat16), w2.astype(jnp.bfloat16)
    h = jnp.dot(x.astype(jnp.bfloat16), w1b, preferred_element_type=jnp.float32)
    h = jnp.tanh((h + b1.astype(jnp.float32)).astype(td)).astype(jnp.bfloat16)
    y = jnp.dot(h, w2b, preferred_element_type=jnp.float32)
    ref_emul = jnp.tanh(y + b2.astype(jnp.float32))
    assert jnp.allclose(out, ref_emul, atol=2e-2, rtol=2e-2)

    # Loose check against the pure-f32 forward (bf16 MXU feed costs ~1e-2 abs).
    ref_f32 = jnp.tanh(jnp.tanh(x @ w1 + b1) @ w2 + b2)
    assert jnp.allclose(out, ref_f32, atol=6e-2, rtol=6e-2)

    print("KERNEL_OK")
</pallas_src>

<mosaic_0001>
module attributes {stable_mosaic.version = 11 : i64} {
  func.func @_encoder_kernel(%arg0: i32, %arg1: i32, %arg2: memref<8x128xbf16, #tpu.memory_space<vmem>>, %arg3: memref<128x128xbf16, #tpu.memory_space<vmem>>, %arg4: memref<1x128xf32, #tpu.memory_space<vmem>>, %arg5: memref<128x128xbf16, #tpu.memory_space<vmem>>, %arg6: memref<1x128xf32, #tpu.memory_space<vmem>>, %arg7: memref<8x128xf32, #tpu.memory_space<vmem>>, %arg8: memref<8x128xbf16, #tpu.memory_space<vmem>>) attributes {dimension_semantics = [#tpu.dimension_semantics<parallel>, #tpu.dimension_semantics<arbitrary>], iteration_bounds = array<i64: 1, 1>, scalar_prefetch = 0 : i64, scratch_operands = 1 : i64, tpu.core_type = #tpu.core_type<tc>, window_params = [{transform_indices = @transform_0, window_bounds = array<i64: 8, 128>}, {pipeline_mode = #tpu.pipeline_mode<synchronous>, transform_indices = @transform_1, window_bounds = array<i64: 128, 128>}, {pipeline_mode = #tpu.pipeline_mode<synchronous>, transform_indices = @transform_2, window_bounds = array<i64: 1, 128>}, {transform_indices = @transform_3, window_bounds = array<i64: 128, 128>}, {transform_indices = @transform_4, window_bounds = array<i64: 1, 128>}, {transform_indices = @transform_5, window_bounds = array<i64: 8, 128>}]} {
    %c0_i32 = arith.constant 0 : i32
    %0 = arith.cmpi eq, %arg1, %c0_i32 : i32
    %1 = arith.extui %0 : i1 to i32
    %c0_i32_0 = arith.constant 0 : i32
    %2 = arith.cmpi ne, %1, %c0_i32_0 : i32
    scf.if %2 {
      %c0_8 = arith.constant 0 : index
      %c0_9 = arith.constant 0 : index
      %11 = vector.load %arg2[%c0_8, %c0_9] : memref<8x128xbf16, #tpu.memory_space<vmem>>, vector<8x128xbf16>
      %c0_10 = arith.constant 0 : index
      %c0_11 = arith.constant 0 : index
      %12 = vector.load %arg3[%c0_10, %c0_11] : memref<128x128xbf16, #tpu.memory_space<vmem>>, vector<128x128xbf16>
      %cst_12 = arith.constant dense<0.000000e+00> : vector<8x128xf32>
      %13 = tpu.matmul %11, %12, %cst_12 {dimension_numbers = #tpu.dot_dimension_numbers<[1], [0], [0], [1], [0, 0, 1, 1], [], []>} : vector<8x128xbf16>, vector<128x128xbf16>, vector<8x128xf32> -> vector<8x128xf32>
      %c0_13 = arith.constant 0 : index
      %c0_14 = arith.constant 0 : index
      %14 = vector.load %arg4[%c0_13, %c0_14] : memref<1x128xf32, #tpu.memory_space<vmem>>, vector<1x128xf32>
      %15 = vector.broadcast %14 : vector<1x128xf32> to vector<8x128xf32>
      %16 = arith.addf %13, %15 : vector<8x128xf32>
      %17 = math.tanh %16 : vector<8x128xf32>
      %18 = arith.truncf %17 : vector<8x128xf32> to vector<8x128xbf16>
      %c0_15 = arith.constant 0 : index
      %c0_16 = arith.constant 0 : index
      %19 = vector.load %arg8[%c0_15, %c0_16] : memref<8x128xbf16, #tpu.memory_space<vmem>>, vector<8x128xbf16>
      tpu.vector_store %arg8[%c0_15, %c0_16], %18 {strides = array<i32>} : memref<8x128xbf16, #tpu.memory_space<vmem>>, vector<8x128xbf16>,
    } else {
    }
    %c0 = arith.constant 0 : index
    %c0_1 = arith.constant 0 : index
    %3 = vector.load %arg8[%c0, %c0_1] : memref<8x128xbf16, #tpu.memory_space<vmem>>, vector<8x128xbf16>
    %c0_2 = arith.constant 0 : index
    %c0_3 = arith.constant 0 : index
    %4 = vector.load %arg5[%c0_2, %c0_3] : memref<128x128xbf16, #tpu.memory_space<vmem>>, vector<128x128xbf16>
    %cst = arith.constant dense<0.000000e+00> : vector<8x128xf32>
    %5 = tpu.matmul %3, %4, %cst {dimension_numbers = #tpu.dot_dimension_numbers<[1], [0], [0], [1], [0, 0, 1, 1], [], []>} : vector<8x128xbf16>, vector<128x128xbf16>, vector<8x128xf32> -> vector<8x128xf32>
    %c0_4 = arith.constant 0 : index
    %c0_5 = arith.constant 0 : index
    %6 = vector.load %arg6[%c0_4, %c0_5] : memref<1x128xf32, #tpu.memory_space<vmem>>, vector<1x128xf32>
    %7 = vector.broadcast %6 : vector<1x128xf32> to vector<8x128xf32>
    %8 = arith.addf %5, %7 : vector<8x128xf32>
    %9 = math.tanh %8 : vector<8x128xf32>
    %c0_6 = arith.constant 0 : index
    %c0_7 = arith.constant 0 : index
    %10 = vector.load %arg7[%c0_6, %c0_7] : memref<8x128xf32, #tpu.memory_space<vmem>>, vector<8x128xf32>
    tpu.vector_store %arg7[%c0_6, %c0_7], %9 {strides = array<i32>} : memref<8x128xf32, #tpu.memory_space<vmem>>, vector<8x128xf32>,
    return
  }
  func.func @transform_0(%arg0: i32, %arg1: i32) -> (i32, i32) {
    %c0_i32 = arith.constant 0 : i32
    %c0_i32_0 = arith.constant 0 : i32
    return %arg0, %c0_i32 : i32, i32
  }
  func.func @transform_1(%arg0: i32, %arg1: i32) -> (i32, i32) {
    %c0_i32 = arith.constant 0 : i32
    %c0_i32_0 = arith.constant 0 : i32
    %c0_i32_1 = arith.constant 0 : i32
    return %c0_i32, %c0_i32_0 : i32, i32
  }
  func.func @transform_2(%arg0: i32, %arg1: i32) -> (i32, i32) {
    %c0_i32 = arith.constant 0 : i32
    %c0_i32_0 = arith.constant 0 : i32
    %c0_i32_1 = arith.constant 0 : i32
    return %c0_i32, %c0_i32_0 : i32, i32
  }
  func.func @transform_3(%arg0: i32, %arg1: i32) -> (i32, i32) {
    %c0_i32 = arith.constant 0 : i32
    %c0_i32_0 = arith.constant 0 : i32
    return %c0_i32, %arg1 : i32, i32
  }
  func.func @transform_4(%arg0: i32, %arg1: i32) -> (i32, i32) {
    %c0_i32 = arith.constant 0 : i32
    %c0_i32_0 = arith.constant 0 : i32
    return %c0_i32, %arg1 : i32, i32
  }
  func.func @transform_5(%arg0: i32, %arg1: i32) -> (i32, i32) {
    %c0_i32 = arith.constant 0 : i32
    return %arg0, %arg1 : i32, i32
  }
}

</mosaic_0001>

<bundles_post_ra>
// kernel: tpu_custom_call.1
= control target key start
LH: loop header
LB: loop body
LE: loop exit
PB: predicated region body
PF: predicated region fallthrough
CT: control target
= control target key end

     0   :  { %10 = vsyncpa [#allocation4], 0  ;;  %s556_s0 = inlined_call_operand.hbm [shape: bf16[8,128], index: 0, kind: input, shape index: {}]   ;;  %s557_s1 = inlined_call_operand.hbm [shape: bf16[128,128], index: 1, kind: input, shape index: {}]   ;;  %s558_s2 = inlined_call_operand.vmem [shape: f32[1,128], index: 2, kind: input, shape index: {}]   ;;  %s559_s3 = inlined_call_operand.hbm [shape: bf16[128,128], index: 3, kind: input, shape index: {}]   ;;  %s560_s4 = inlined_call_operand.vmem [shape: f32[1,128], index: 4, kind: input, shape index: {}]   ;;  %s561_s5 = inlined_call_operand.hbm [shape: f32[8,128], index: 5, kind: output, shape index: {}]  }
   0x1   :  { %11 = vsyncpa [#allocation7], 0 }
   0x2   :  { %12 = vsyncpa [#allocation5], 0  ;;  %s500_s18 = smov [#allocation6]  }
   0x3   :  { %s28_s19 = sshll.u32 %s500_s18, 4  ;;  %s29_s19 = int_to_ptr.vmem [resolvable:$true] %s28_s19 }
   0x4   :  { %s422_s20 = scalar_lea.vmem %s29_s19, 1024  ;;  %p427_p1 = scmp.lt.s32.totalorder %s29_s19, %s29_s19 }
   0x5   :  { %p423_p0 = scmp.ne.s32.totalorder %s29_s19, %s422_s20  ;;  %p428_p2 = scmp.lt.s32.totalorder %s422_s20, %s422_s20 }
   0x7   :  { %p429_p3 = por %p428_p2, %p427_p1 }
   0x9   :  { %p430_p4 = pnand %p429_p3, %p423_p0 }
   0xb   :  { %433 = shalt.err (!%p430_p4)
}
   0xc   :  { %s501_s21 = smov 64   ;;  %s502_s22 = smov 4  }
   0xd   :  { %34 = dma.hbm_to_vmem [thread:$0]  %s557_s1, 1024, %s29_s19, [#allocation7], %s501_s21, %s501_s21, %s502_s22  }
   0xe   :  { %s503_s25 = smov [#allocation3]   ;;  %s504_s27 = smov [#allocation8]  }
   0xf   :  { %s19_s26 = sshll.u32 %s503_s25, 4  ;;  %s42_s28 = sshll.u32 %s504_s27, 4  ;;  %s20_s26 = int_to_ptr.vmem [resolvable:$true] %s19_s26  ;;  %s43_s28 = int_to_ptr.vmem [resolvable:$true] %s42_s28 }
  0x10   :  { %s442_s29 = scalar_lea.vmem %s20_s26, 64  ;;  %p447_p6 = scmp.lt.s32.totalorder %s20_s26, %s20_s26 }
  0x11   :  { %p443_p5 = scmp.ne.s32.totalorder %s20_s26, %s442_s29  ;;  %p448_p7 = scmp.lt.s32.totalorder %s442_s29, %s442_s29 }
  0x13   :  { %p449_p8 = por %p448_p7, %p447_p6 }
  0x15   :  { %p450_p9 = pnand %p449_p8, %p443_p5 }
  0x17   :  { %453 = shalt.err (!%p450_p9)
}
  0x18   :  { %22 = dma.hbm_to_vmem [thread:$0]  %s556_s0, 64, %s20_s26, [#allocation4]  }
  0x19   :  { %s462_s7 = scalar_lea.vmem %s43_s28, 1024  ;;  %p467_p11 = scmp.lt.s32.totalorder %s43_s28, %s43_s28 }
  0x1a   :  { %p463_p10 = scmp.ne.s32.totalorder %s43_s28, %s462_s7  ;;  %p468_p12 = scmp.lt.s32.totalorder %s462_s7, %s462_s7 }
  0x1c   :  { %p469_p13 = por %p468_p12, %p467_p11 }
  0x1e   :  { %p470_p0 = pnand %p469_p13, %p463_p10 }
  0x20   :  { %473 = shalt.err (!%p470_p0)
}
  0x21   :  { %48 = dma.hbm_to_vmem [thread:$0]  %s559_s3, 1024, %s43_s28, [#allocation7], %s501_s21, %s501_s21, %s502_s22  }
  0x22   :  { %494 = dma.done.wait [#allocation4], 64  }
  0x23   :  { %495 = vsyncadd [#allocation4], 4294967232 }
  0x24   :  { %496 = dma.done.wait [#allocation7], 2048  }
  0x25   :  { %497 = vsyncadd [#allocation7], 4294965248  ;;  %v505_v0 = vmov 0.0   ;;  %vm506_vm0 = vmmov 0   ;;  %v394_v1 = vld [vmem:[#allocation6 + $0x38] sm:$0xff]   ;;  %v395_v2 = vld [vmem:[#allocation6 + $0x30] sm:$0xff]  }
  0x26   :  { %346 = vmatprep.subr.bf16.mxu0 %v505_v0  ;;  %362 = vmatprep.mubr.msk.bf16.mxu0 %vm506_vm0, %v505_v0  ;;  %v396_v3 = vld [vmem:[#allocation6 + $0x28] sm:$0xff]   ;;  %v397_v4 = vld [vmem:[#allocation6 + $0x20] sm:$0xff]   ;;  %v402_v5 = vld [vmem:[#allocation8 + $0x38] sm:$0xff]  }
  0x27   :  { %366 = vmatprep.subr.bf16.mxu1 %v505_v0  ;;  %382 = vmatprep.mubr.msk.bf16.mxu1 %vm506_vm0, %v505_v0  ;;  %v398_v6 = vld [vmem:[#allocation6 + $0x18] sm:$0xff]   ;;  %v399_v7 = vld [vmem:[#allocation6 + $0x10] sm:$0xff]   ;;  %v400_v8 = vld [vmem:[#allocation6 + $0x8] sm:$0xff]  }
  0x28   :  { %347 = vmatpush3.bf16.msra.mxu0 %v394_v1  ;;  %367 = vmatpush3.bf16.msra.mxu1 %v402_v5  ;;  %v401_v9 = vld [vmem:[#allocation6] sm:$0xff]   ;;  %v65_v10 = vld [vmem:[#allocation3] sm:$0xf]  ;;  %v403_v11 = vld [vmem:[#allocation8 + $0x30] sm:$0xff]  }
  0x29   :  { %348 = vmatprep.subr.bf16.mxu0 %v505_v0  ;;  %368 = vmatprep.subr.bf16.mxu1 %v505_v0  ;;  %v404_v12 = vld [vmem:[#allocation8 + $0x28] sm:$0xff]   ;;  %v405_v13 = vld [vmem:[#allocation8 + $0x20] sm:$0xff]   ;;  %v406_v14 = vld [vmem:[#allocation8 + $0x18] sm:$0xff]  }
  0x2a   :  { %v407_v15 = vld [vmem:[#allocation8 + $0x10] sm:$0xff]   ;;  %v408_v16 = vld [vmem:[#allocation8 + $0x8] sm:$0xff]   ;;  %v409_v17 = vld [vmem:[#allocation8] sm:$0xff]  }
  0x2b   :  { %v310_v18 = vld [vmem:[%s558_s2] ss:$0 sm:$0xff]  ;;  %s507_s2 = smov [#allocation9]  }
  0x2c   :  { %349 = vmatpush3.bf16.msra.mxu0 %v395_v2  ;;  %369 = vmatpush3.bf16.msra.mxu1 %v403_v11  ;;  %v319_v27 = vld [vmem:[%s560_s4] ss:$0 sm:$0xff]  ;;  %s300_s11 = sshll.u32 %s507_s2, 4  ;;  %s301_s11 = int_to_ptr.vmem [resolvable:$true] %s300_s11 }
  0x2d   :  { %350 = vmatprep.subr.bf16.mxu0 %v505_v0  ;;  %370 = vmatprep.subr.bf16.mxu1 %v505_v0  ;;  %s474_s12 = scalar_lea.vmem %s301_s11, 128  ;;  %p479_p2 = scmp.lt.s32.totalorder %s301_s11, %s301_s11 }
  0x2e   :  { %p475_p1 = scmp.ne.s32.totalorder %s301_s11, %s474_s12  ;;  %p480_p3 = scmp.lt.s32.totalorder %s474_s12, %s474_s12 }
  0x30   :  { %351 = vmatpush3.bf16.msra.mxu0 %v396_v3  ;;  %371 = vmatpush3.bf16.msra.mxu1 %v404_v12  ;;  %p481_p4 = por %p480_p3, %p479_p2 }
  0x31   :  { %352 = vmatprep.subr.bf16.mxu0 %v505_v0  ;;  %372 = vmatprep.subr.bf16.mxu1 %v505_v0 }
  0x32   :  { %p482_p5 = pnand %p481_p4, %p475_p1 }
  0x34   :  { %353 = vmatpush3.bf16.msra.mxu0 %v397_v4  ;;  %373 = vmatpush3.bf16.msra.mxu1 %v405_v13 }
  0x35   :  { %354 = vmatprep.subr.bf16.mxu0 %v505_v0  ;;  %374 = vmatprep.subr.bf16.mxu1 %v505_v0 }
  0x38   :  { %355 = vmatpush3.bf16.msra.mxu0 %v398_v6  ;;  %375 = vmatpush3.bf16.msra.mxu1 %v406_v14 }
  0x39   :  { %356 = vmatprep.subr.bf16.mxu0 %v505_v0  ;;  %376 = vmatprep.subr.bf16.mxu1 %v505_v0 }
  0x3c   :  { %357 = vmatpush3.bf16.msra.mxu0 %v399_v7  ;;  %377 = vmatpush3.bf16.msra.mxu1 %v407_v15 }
  0x3d   :  { %358 = vmatprep.subr.bf16.mxu0 %v505_v0  ;;  %378 = vmatprep.subr.bf16.mxu1 %v505_v0 }
  0x40   :  { %359 = vmatpush3.bf16.msra.mxu0 %v400_v8  ;;  %379 = vmatpush3.bf16.msra.mxu1 %v408_v16 }
  0x41   :  { %360 = vmatprep.subr.bf16.mxu0 %v505_v0  ;;  %380 = vmatprep.subr.bf16.mxu1 %v505_v0 }
  0x44   :  { %361 = vmatpush3.bf16.msra.mxu0 %v401_v9  ;;  %381 = vmatpush3.bf16.msra.mxu1 %v409_v17 }
  0x47   :  { %363 = vmatmul.mubr.bf16.vlgmr.msra.gmra.mxu0 %v65_v10 }
 0x107   :  { %v171_v19 = vpop.f32.mrf.mxu0 }
 0x108   :  { %v172_v20 = vadd.f32 %v310_v18, %v171_v19 }
 0x109   :  { %v364_v21 = vpop.f32.mrf.mxu0 }
 0x10a   :  { %410 = vtanh.f32 %v172_v20 }
 0x10b   :  { %v174_v22 = vpop.f32.mrf.mxu0 }
 0x10d   :  { %v365_v23 = vpop.f32.mrf.mxu0 }
 0x117   :  { %v411_v24 = vpop.eup %410 }
 0x118   :  { %v178_v25 = vpack.c.bf16 %v411_v24, %v411_v24 }
 0x11a   :  { %179 = vst [vmem:[#allocation2] sm:$0xf] %v178_v25 }
 0x121   :  { %v180_v26 = vld [vmem:[#allocation2] sm:$0xf] }
 0x122   :  { %383 = vmatmul.mubr.bf16.vlgmr.msra.gmra.mxu1 %v180_v26 }
 0x1e2   :  { %v286_v28 = vpop.f32.mrf.mxu1 }
 0x1e3   :  { %v287_v29 = vadd.f32 %v319_v27, %v286_v28 }
 0x1e4   :  { %v384_v30 = vpop.f32.mrf.mxu1 }
 0x1e5   :  { %412 = vtanh.f32 %v287_v29 }
 0x1e6   :  { %v289_v31 = vpop.f32.mrf.mxu1 }
 0x1e8   :  { %v385_v32 = vpop.f32.mrf.mxu1 }
 0x1f2   :  { %v413_v33 = vpop.eup %412 }
 0x1f3   :  { %293 = vst [vmem:[#allocation9] sm:$0xff] %v413_v33 }
 0x1f4   :  { %485 = shalt.err (!%p482_p5)
}
 0x1f5   :  { %303 = dma.vmem_to_hbm [thread:$0]  %s301_s11, 128, %s561_s5, [#allocation5]  }
 0x1f6   :  { %498 = dma.done.wait [#allocation5], 128  }
 0x1f7   :  { %499 = vsyncadd [#allocation5], 4294967168 }
 0x1f8   :  { %307 = vsyncpa [#allocation4], 1 }
 0x1f9   :  { %308 = vsyncpa [#allocation7], 1 }
 0x1fa   :  { %309 = vsyncpa [#allocation5], 1 }

</bundles_post_ra>
